<compile_context>
chip_gen: v7x
topology: tpu7x:2x2x1
jax: 0.10.0
libtpu: 0.0.40
codegen_flags: <defaults>
</compile_context>

<pallas_src>
import jax
import jax.numpy as jnp
from jax.experimental import pallas as pl
from jax.experimental.pallas import tpu as pltpu


def _choose_tile(lead_steps, axis_size, other_block_elems, itemsize,
                 budget_bytes=8 << 20, min_steps=4):
    """Pick a tile (multiple of 8, divides axis_size) for the second output axis.

    Largest tile whose double-buffered in+out footprint fits `budget_bytes`,
    preferring one that still yields >= min_steps total grid steps so the
    pipeline has something to overlap.  Returns None to mean "do not tile".
    """
    cands = [t for t in range(8, axis_size + 1, 8) if axis_size % t == 0]
    if not cands:
        return None

    def footprint(t):  # 2 input buffers + 2 output buffers per step
        return 4 * t * other_block_elems * itemsize

    fitting = [t for t in cands if footprint(t) <= budget_bytes]
    if not fitting:
        return min(cands)  # best effort: smallest legal tile
    enough_steps = [t for t in fitting if lead_steps * (axis_size // t) >= min_steps]
    return max(enough_steps) if enough_steps else max(fitting)


def _build_permute_call(in_shape, dtype, order, use_einshape):
    out_shape = tuple(in_shape[a] for a in order)
    itemsize = jnp.dtype(dtype).itemsize

    lead = order[0]                               # input axis -> output axis 0
    rest_in = [a for a in range(4) if a != lead]  # kernel-visible input axes
    kperm = tuple(rest_in.index(a) for a in order[1:])
    eq = "abc->" + "".join("abc"[p] for p in kperm)

    # ---- tile the second OUTPUT axis (input axis order[1]) ------------------
    a1 = order[1]
    other_elems = 1
    for a in rest_in:
        if a != a1:
            other_elems *= in_shape[a]

    tile = None
    if a1 != 3:  # never tile the input lane dim: keep W reads full & contiguous
        tile = _choose_tile(in_shape[lead], in_shape[a1], other_elems, itemsize)
    if tile is None or tile >= in_shape[a1]:
        tile = in_shape[a1]
        n_tiles = 1
    else:
        n_tiles = in_shape[a1] // tile

    grid = (in_shape[lead], n_tiles)

    in_block = tuple(
        pl.Squeezed() if a == lead else (tile if a == a1 else in_shape[a])
        for a in range(4)
    )
    out_block = (pl.Squeezed(), tile, out_shape[2], out_shape[3])

    def in_index_map(i, j):
        idx = [0, 0, 0, 0]
        idx[lead] = i
        idx[a1] = j
        return tuple(idx)

    def out_index_map(i, j):
        return (i, j, 0, 0)

    def kernel(x_ref, o_ref):
        x = x_ref[...]
        if use_einshape:
            # Lane-layout-aware relayout (fewer XLU passes / vreg copies).
            o_ref[...] = pltpu.einshape(eq, x)
        else:
            o_ref[...] = jnp.transpose(x, kperm)

    # VMEM budget: in tile + out tile, double-buffered, plus headroom.
    block_bytes = tile * other_elems * itemsize
    vmem_limit = int(min(max(8 * block_bytes + (4 << 20), 16 << 20), 64 << 20))

    total_bytes = itemsize
    for d in in_shape:
        total_bytes *= d

    return pl.pallas_call(
        kernel,
        out_shape=jax.ShapeDtypeStruct(out_shape, dtype),
        grid_spec=pltpu.PrefetchScalarGridSpec(
            num_scalar_prefetch=0,
            grid=grid,
            in_specs=[pl.BlockSpec(in_block, in_index_map)],
            out_specs=pl.BlockSpec(out_block, out_index_map),
        ),
        compiler_params=pltpu.CompilerParams(
            dimension_semantics=("parallel", "parallel"),
            vmem_limit_bytes=vmem_limit,
        ),
        cost_estimate=pl.CostEstimate(
            flops=0, transcendentals=0, bytes_accessed=2 * total_bytes
        ),
    )


def permute4batchnorm(x, order, *, bypass_below_bytes=0):
    """Pallas equivalent of Permute4Batchnorm(order)(x) for 4-D tensors."""
    assert x.ndim == 4 and len(order) == 4, "this kernel handles 4-D tensors"
    order = tuple(int(a) for a in order)
    assert sorted(order) == [0, 1, 2, 3], "order must be a permutation of axes"

    # For tiny tensors a standalone HBM round trip + launch overhead dwarfs
    # any kernel-level tuning; production code should set this to ~1 MiB (or
    # fuse the permute into the adjacent BatchNorm kernel).  Default 0 keeps
    # the kernel exercised in this script.
    if x.size * x.dtype.itemsize < bypass_below_bytes:
        return jnp.transpose(x, order)

    use_ein = hasattr(pltpu, "einshape")
    try:
        f = _build_permute_call(x.shape, x.dtype, order, use_einshape=use_ein)
        out = f(x)
        jax.block_until_ready(out)
        return out
    except Exception:
        if not use_ein:
            raise
        # einshape could not lower this permutation; fall back to transpose.
        f = _build_permute_call(x.shape, x.dtype, order, use_einshape=False)
        out = f(x)
        jax.block_until_ready(out)
        return out


if __name__ == "__main__":
    key = jax.random.PRNGKey(0)
    # Small NCHW input consistent with a conv/batchnorm pipeline.
    x = jax.random.normal(key, (2, 4, 16, 16), dtype=jnp.float32)
    order = (0, 2, 3, 1)  # NCHW -> NHWC

    out = permute4batchnorm(x, order)
    out = jax.block_until_ready(out)

    ref = jnp.transpose(x, order)
    assert out.shape == ref.shape, (out.shape, ref.shape)
    assert jnp.array_equal(out, ref), "mismatch vs reference permute"
    print("KERNEL_OK")
</pallas_src>

<mosaic_0001>
module attributes {stable_mosaic.version = 11 : i64} {
  func.func @kernel(%arg0: i32, %arg1: i32, %arg2: memref<1x4x8x16xf32, #tpu.memory_space<vmem>>, %arg3: memref<1x8x16x4xf32, #tpu.memory_space<vmem>>) attributes {dimension_semantics = [#tpu.dimension_semantics<parallel>, #tpu.dimension_semantics<parallel>], iteration_bounds = array<i64: 2, 2>, scalar_prefetch = 0 : i64, scratch_operands = 0 : i64, tpu.core_type = #tpu.core_type<tc>, window_params = [{transform_indices = @transform_0, window_bounds = array<i64: 1, 4, 8, 16>}, {transform_indices = @transform_1, window_bounds = array<i64: 1, 8, 16, 4>}]} {
    %c0 = arith.constant 0 : index
    %c0_0 = arith.constant 0 : index
    %c0_1 = arith.constant 0 : index
    %c0_2 = arith.constant 0 : index
    %0 = vector.load %arg2[%c0, %c0_0, %c0_1, %c0_2] : memref<1x4x8x16xf32, #tpu.memory_space<vmem>>, vector<1x4x8x16xf32>
    %1 = vector.shape_cast %0 : vector<1x4x8x16xf32> to vector<4x8x16xf32>
    %2 = tpu.transpose %1, [1, 2, 0] : vector<4x8x16xf32> -> vector<8x16x4xf32>
    %c0_3 = arith.constant 0 : index
    %c0_4 = arith.constant 0 : index
    %c0_5 = arith.constant 0 : index
    %c0_6 = arith.constant 0 : index
    %3 = vector.load %arg3[%c0_3, %c0_4, %c0_5, %c0_6] : memref<1x8x16x4xf32, #tpu.memory_space<vmem>>, vector<1x8x16x4xf32>
    %4 = vector.shape_cast %3 : vector<1x8x16x4xf32> to vector<8x16x4xf32>
    %5 = vector.shape_cast %2 : vector<8x16x4xf32> to vector<1x8x16x4xf32>
    tpu.vector_store %arg3[%c0_3, %c0_4, %c0_5, %c0_6], %5 {strides = array<i32>} : memref<1x8x16x4xf32, #tpu.memory_space<vmem>>, vector<1x8x16x4xf32>,
    return
  }
  func.func @transform_0(%arg0: i32, %arg1: i32) -> (i32, i32, i32, i32) {
    %c0_i32 = arith.constant 0 : i32
    %c0_i32_0 = arith.constant 0 : i32
    %c0_i32_1 = arith.constant 0 : i32
    return %arg0, %c0_i32, %arg1, %c0_i32_0 : i32, i32, i32, i32
  }
  func.func @transform_1(%arg0: i32, %arg1: i32) -> (i32, i32, i32, i32) {
    %c0_i32 = arith.constant 0 : i32
    %c0_i32_0 = arith.constant 0 : i32
    %c0_i32_1 = arith.constant 0 : i32
    return %arg0, %arg1, %c0_i32, %c0_i32_0 : i32, i32, i32, i32
  }
}

module attributes {stable_mosaic.version = 11 : i64} {
  func.func @kernel(%arg0: i32, %arg1: i32, %arg2: memref<1x4x8x16xf32, #tpu.memory_space<vmem>>, %arg3: memref<1x8x16x4xf32, #tpu.memory_space<vmem>>) attributes {dimension_semantics = [#tpu.dimension_semantics<parallel>, #tpu.dimension_semantics<parallel>], iteration_bounds = array<i64: 2, 2>, scalar_prefetch = 0 : i64, scratch_operands = 0 : i64, tpu.core_type = #tpu.core_type<tc>, window_params = [{transform_indices = @transform_0, window_bounds = array<i64: 1, 4, 8, 16>}, {transform_indices = @transform_1, window_bounds = array<i64: 1, 8, 16, 4>}]} {
    %c0 = arith.constant 0 : index
    %c0_0 = arith.constant 0 : index
    %c0_1 = arith.constant 0 : index
    %c0_2 = arith.constant 0 : index
    %0 = vector.load %arg2[%c0, %c0_0, %c0_1, %c0_2] : memref<1x4x8x16xf32, #tpu.memory_space<vmem>>, vector<1x4x8x16xf32>
    %1 = vector.shape_cast %0 : vector<1x4x8x16xf32> to vector<4x8x16xf32>
    %2 = tpu.transpose %1, [1, 2, 0] : vector<4x8x16xf32> -> vector<8x16x4xf32>
    %c0_3 = arith.constant 0 : index
    %c0_4 = arith.constant 0 : index
    %c0_5 = arith.constant 0 : index
    %c0_6 = arith.constant 0 : index
    %3 = vector.load %arg3[%c0_3, %c0_4, %c0_5, %c0_6] : memref<1x8x16x4xf32, #tpu.memory_space<vmem>>, vector<1x8x16x4xf32>
    %4 = vector.shape_cast %3 : vector<1x8x16x4xf32> to vector<8x16x4xf32>
    %5 = vector.shape_cast %2 : vector<8x16x4xf32> to vector<1x8x16x4xf32>
    tpu.vector_store %arg3[%c0_3, %c0_4, %c0_5, %c0_6], %5 {strides = array<i32>} : memref<1x8x16x4xf32, #tpu.memory_space<vmem>>, vector<1x8x16x4xf32>,
    return
  }
  func.func @transform_0(%arg0: i32, %arg1: i32) -> (i32, i32, i32, i32) {
    %c0_i32 = arith.constant 0 : i32
    %c0_i32_0 = arith.constant 0 : i32
    %c0_i32_1 = arith.constant 0 : i32
    return %arg0, %c0_i32, %arg1, %c0_i32_0 : i32, i32, i32, i32
  }
  func.func @transform_1(%arg0: i32, %arg1: i32) -> (i32, i32, i32, i32) {
    %c0_i32 = arith.constant 0 : i32
    %c0_i32_0 = arith.constant 0 : i32
    %c0_i32_1 = arith.constant 0 : i32
    return %arg0, %arg1, %c0_i32, %c0_i32_0 : i32, i32, i32, i32
  }
}

</mosaic_0001>

<bundles_post_ra>
// kernel: tpu_custom_call.1
= control target key start
LH: loop header
LB: loop body
LE: loop exit
PB: predicated region body
PF: predicated region fallthrough
CT: control target
= control target key end

     0   :  { %6 = vsyncpa [#allocation3], 0  ;;  %s1782_s0 = inlined_call_operand.hbm [shape: f32[2,4,16,16], index: 0, kind: input, shape index: {}]   ;;  %s1783_s1 = inlined_call_operand.vmem [shape: f32[2,16,16,4], index: 1, kind: output, shape index: {}]  }
   0x1   :  { %8 = vsyncpa [#allocation3 + $0x1], 0  ;;  %s1544_s6 = smov 0   ;;  %s1546_s7 = smov 0  }
   0x2   :  { %s1548_s8 = smov 0   ;;  %s1550_s9 = smov 0  }
   0x3   :  { %s1552_s10 = smov 0   ;;  %s1554_s11 = smov 0  }
   0x4   :  { %s1556_s12 = smov 0   ;;  %s1558_s13 = smov 0  }
   0x5 LB: > { %s1337_s14 = sadd.s32 4294967295, %s1525_s13   ;;  %s23_s15 = sadd.s32 1, %s1517_s11  ;;  %s1525_s13 = sphi %s1558_s13, %s14_s13   ;;  %s1521_s12 = sphi %s1556_s12, %s1794_s12   ;;  %s1517_s11 = sphi %s1554_s11, %s1793_s11   ;;  %s1513_s10 = sphi %s1552_s10, %s1792_s10   ;;  %s1509_s9 = sphi %s1550_s9, %s1791_s9   ;;  %s1505_s8 = sphi %s1548_s8, %s1790_s8   ;;  %s1501_s7 = sphi %s1546_s7, %s1789_s7   ;;  %s1497_s6 = sphi %s1544_s6, %s1788_s6  }
   0x6   : > { %p24_p0 = scmp.ge.s32.totalorder %s23_s15, 2  ;;  %s26_s16 = sadd.s32 1, %s1521_s12 }
   0x7   : > { %s35_s17 = sadd.s32 1, %s1505_s8  ;;  %p42_p1 = scmp.ne.s32.totalorder %s1505_s8, %s1501_s7 }
   0x8   : > { %s1796_s15 = smov (%p24_p0, %s23_s15), 0  ;;  %s1798_s16 = smov (!%p24_p0, %s26_s16), %s1521_s12 }
   0x9   : > { %s31_s18 = ssub.s32 %s1517_s11, %s1796_s15  ;;  %p43_p2 = scmp.eq.s32.totalorder %s1525_s13, 0 }
   0xa   : > { %p28_p3 = scmp.ge.s32.totalorder %s1798_s16, 2  ;;  %p48_p4 = scmp.ne.s32.totalorder %s1501_s7, %s1497_s6 }
   0xb   : > { %p1595_p5 = por %p43_p2, %p42_p1  ;;  %p49_p6 = scmp.eq.s32.totalorder %s1337_s14, 0 }
   0xc   : > { %s1800_s16 = smov (%p28_p3, %s1798_s16), 0  ;;  %p1358_p8 = scmp.lt.s32.totalorder %s1525_s13, 4 }
   0xd   : > { %p1601_p7 = por %p49_p6, %p48_p4  ;;  %s30_s21 = ssub.s32 %s1521_s12, %s1800_s16 }
   0xe   : > { %s32_s22 = sor.u32 %s31_s18, %s30_s21  ;;  %s100_s23 = sand.u32 1, %s1505_s8  }
   0xf   : > { %p33_p9 = scmp.eq.s32.totalorder %s32_s22, 0  ;;  %s1341_s24 = sshll.u32 %s100_s23, 5 }
  0x10   : > { %s1342_s25 = sshll.u32 %s1521_s12, 3  ;;  %s104_s29 = scalar_lea.vmem [#allocation2], %s1341_s24 }
  0x11   : > { %s1611_s26 = scalar_select %p33_p9, %s1505_s8, %s35_s17  }
  0x12   : > { %s109_s27 = sadd.s32 %s1517_s11, %s1342_s25  ;;  %s112_s30 = sshll.u32 %s104_s29, 4  ;;  %s1619_s30 = int_to_ptr.vmem [resolvable:$true] %s112_s30 }
  0x13   : > { %s1343_s28 = sshll.u32 %s109_s27, 7  ;;  %p1625_p10 = pnand %p1358_p8, %p1595_p5 }
  0x14   : > { %s1617_s4 = scalar_lea.hbm %s1782_s0, %s1343_s28  ;;  %s1630_s6 = scalar_lea.sflag [#allocation3], %s100_s23 }
  0x15   : > { %s1429_s14 = scalar_lea.hbm %s1617_s4, 512  ;;  %p1431_p13 = pneg %p1625_p10 }
  0x16   : > { %p1430_p12 = scmp.ne.s32.totalorder %s1617_s4, %s1429_s14  ;;  %s1434_s19 = scalar_lea.hbm %s1782_s0, 2048 }
  0x17   : > { %p1435_p2 = scmp.lt.u32.totalorder %s1617_s4, %s1782_s0  ;;  %p1436_p3 = scmp.lt.u32.totalorder %s1434_s19, %s1429_s14 }
  0x18   : > { %p1432_p0 = pnand %p1431_p13, %p1430_p12  ;;  %p1438_p5 = scmp.lt.u32.totalorder %s1429_s14, %s1617_s4 }
  0x19   : > { %p1437_p4 = por %p1436_p3, %p1435_p2 }
  0x1a   : > { %p1433_p1 = pneg %p1432_p0 }
  0x1b   : > { %p1439_p6 = por %p1438_p5, %p1437_p4 }
  0x1d   : > { %p1440_p8 = pnand %p1439_p6, %p1433_p1 }
  0x1f   : > { %1443 = shalt.err (!%p1440_p8)
}
  0x20   : > { %s1444_s23 = scalar_lea.vmem %s1619_s30, 512  ;;  %s1527_s24 = smov [#allocation2]  }
  0x21   : > { %p1445_p9 = scmp.ne.s32.totalorder %s1619_s30, %s1444_s23  ;;  %s1449_s25 = sshll.u32 %s1527_s24, 4  ;;  %s1450_s25 = int_to_ptr.vmem [resolvable:$false] %s1449_s25 }
  0x22   : > { %s1451_s27 = scalar_lea.vmem %s1450_s25, 1024  ;;  %p1452_p11 = scmp.lt.s32.totalorder %s1619_s30, %s1450_s25 }
  0x23   : > { %p1447_p12 = pnand %p1445_p9, %p1431_p13  ;;  %p1453_p2 = scmp.lt.s32.totalorder %s1451_s27, %s1444_s23 }
  0x25   : > { %p1448_p0 = pneg %p1447_p12  ;;  %p1454_p3 = por %p1453_p2, %p1452_p11 }
  0x27   : > { %p1455_p4 = pnand %p1454_p3, %p1448_p0 }
  0x29   : > { %1458 = shalt.err (!%p1455_p4)
}
  0x2a   : > { %s1528_s28 = smov 256   ;;  %s1529_s29 = smov 128  }
  0x2b   : > { %s1530_s2 = smov 8   ;;  %p120_p13 = scmp.lt.s32.totalorder %s1525_s13, 5 }
  0x2c   : > { %1357 = dma.hbm_to_vmem [thread:$0]  (!%p1625_p10), %s1617_s4, 512, %s1619_s30, %s1630_s6, %s1528_s28, %s1529_s29, %s1530_s2  }
  0x2d   : > { %p1787_p1 = scmp.ge.s32.totalorder %s1525_s13, 1 }
  0x2f   : > { %p121_p5 = pnand %p1787_p1, %p120_p13 }
  0x30   : > { %s126_s3 = sand.u32 (!%p121_p5), 1, %s1501_s7  }
  0x31   : > { %124 = sbr.rel (%p121_p5) target bundleno = 376 (0x178), region = 24  ;;  %s1345_s14 = sshll.u32 (!%p121_p5), %s126_s3, 5 }
  0x32   : > { %s127_s17 = scalar_lea.sflag (!%p121_p5), [#allocation3], %s126_s3  ;;  %s130_s18 = scalar_lea.vmem (!%p121_p5), [#allocation2], %s1345_s14 }
  0x38   : > { %1492 = dma.done.wait (%p1601_p7), %s127_s17, 512  }
  0x39   : > { %1494 = vsyncadd (%p1601_p7), %s127_s17, 4294966784  ;;  %v167_v0 = vld [vmem:[%s130_s18 + $0x10] sm:$0xff]  ;;  %v165_v1 = vld [vmem:[%s130_s18] sm:$0xff]  ;;  %v1531_v4 = vmov 1983009808   ;;  %v302_v6 = vlaneseq  ;;  %v1533_v34 = vmov 0.0  }
  0x3a   : > { %233 = vxpose.xlu1.b32.start.end [1/1] (short) (narrow) %v167_v0, 16  ;;  %169 = vxpose.xlu0.b32.start.end [1/1] (short) (narrow) %v165_v1, 16  ;;  %v168_v2 = vld [vmem:[%s130_s18 + $0x18] sm:$0xff]  ;;  %v166_v3 = vld [vmem:[%s130_s18 + $0x8] sm:$0xff]  ;;  %v300_v5 = vunpack.c.l.s4 %v1531_v4  ;;  %v1532_v11 = vmov 1934713408  }
  0x3b   : > { %v303_v10 = vshrl.u32 %v302_v6, 7  ;;  %v332_v12 = vunpack.c.l.s4 %v1532_v11  ;;  %s1346_s20 = sshll.u32 %s1509_s9, 3  ;;  %p155_p7 = scmp.lt.s32.totalorder %s1513_s10, 1  ;;  %vm1217_vm0 = vcmask 31744  }
  0x3c   : > { %v301_v9 = vunpack.c.0.s8 %v300_v5  ;;  %p157_p10 = scmp.lt.s32.totalorder %s1346_s20, 15 }
  0x3d   : > { %v333_v17 = vunpack.c.0.s8 %v332_v12  ;;  %s1802_s10 = smov (!%p155_p7, %s1513_s10), 1 }
  0x3e   : > { %v1666_v15 = vsub.s32 %v301_v9, %v303_v10  ;;  %s1804_s20 = smov (!%p157_p10, %s1346_s20), 15  ;;  %s1348_s4 = sshll.u32 %s1802_s10, 5 }
  0x3f   : > { %265 = vxpose.xlu1.b32.start.end [1/1] (short) (narrow) %v168_v2, 16  ;;  %201 = vxpose.xlu0.b32.start.end [1/1] (short) (narrow) %v166_v3, 16  ;;  %v1670_v25 = vsub.s32 %v333_v17, %v303_v10  ;;  %s1347_s30 = sshll.u32 %s1804_s20, 1 }
  0x40   : > { %s161_s9 = sadd.s32 %s1348_s4, %s1347_s30 }
  0x41   : > { %s1349_s10 = sshll.u32 %s161_s9, 3 }
  0x42   : > { %s1708_s19 = scalar_lea.vmem %s1783_s1, %s1349_s10 }
  0xba   : > { %v249_v7 = vpop.trf.xlu1  ;;  %v185_v8 = vpop.trf.xlu0 }
  0xbb   : > { %v297_v16 = vcombine.low %v185_v8, %v249_v7  ;;  %v298_v22 = vcombine.high %v185_v8, %v249_v7 }
  0xbd   : > { %v305_v23 = vrot.slane %v297_v16, %v1666_v15  ;;  %v312_v31 = vrot.slane %v298_v22, %v1666_v15 }
  0xbe   : > { %v250_v13 = vpop.trf.xlu1  ;;  %v186_v14 = vpop.trf.xlu0 }
  0xbf   : > { %v365_v38 = vcombine.low %v186_v14, %v250_v13  ;;  %v366_v48 = vcombine.high %v186_v14, %v250_v13 }
  0xc1   : > { %v373_v43 = vrot.slane %v365_v38, %v1666_v15  ;;  %v380_v53 = vrot.slane %v366_v48, %v1666_v15 }
  0xc2   : > { %v281_v18 = vpop.trf.xlu1  ;;  %v217_v19 = vpop.trf.xlu0 }
  0xc3   : > { %v313_v20 = vcombine.low %v217_v19, %v281_v18  ;;  %v314_v21 = vcombine.high %v217_v19, %v281_v18 }
  0xc5   : > { %v321_v24 = vrot.slane %v313_v20, %v1666_v15  ;;  %v328_v26 = vrot.slane %v314_v21, %v1666_v15 }
  0xc6   : > { %v282_v29 = vpop.trf.xlu1  ;;  %v218_v30 = vpop.trf.xlu0 }
  0xc7   : > { %v329_v27 = vcombine.low %v305_v23, %v321_v24  ;;  %v330_v28 = vcombine.high %v305_v23, %v321_v24  ;;  %v381_v33 = vcombine.low %v218_v30, %v282_v29  ;;  %v345_v37 = vcombine.low %v312_v31, %v328_v26 }
  0xc8   : > { %v346_v42 = vcombine.high %v312_v31, %v328_v26  ;;  %v382_v44 = vcombine.high %v218_v30, %v282_v29 }
  0xc9   : > { %v337_v32 = vrot.slane %v329_v27, %v1670_v25  ;;  %v344_v36 = vrot.slane %v330_v28, %v1670_v25  ;;  %v389_v39 = vrot.slane %v381_v33, %v1666_v15  ;;  %v353_v41 = vrot.slane %v345_v37, %v1670_v25 }
  0xca   : > { %v360_v46 = vrot.slane %v346_v42, %v1670_v25  ;;  %v396_v49 = vrot.slane %v382_v44, %v1666_v15 }
  0xcb   : > { %433 = vxpose.xlu0.b32.start.end [1/1] (short) (narrow) %v337_v32, 8  ;;  %v361_v35 = vcombine.high %v337_v32, %v1533_v34  ;;  %v362_v40 = vcombine.high %v344_v36, %v1533_v34  ;;  %v363_v45 = vcombine.high %v353_v41, %v1533_v34  ;;  %v397_v47 = vcombine.low %v373_v43, %v389_v39 }
  0xcc   : > { %v364_v50 = vcombine.high %v360_v46, %v1533_v34  ;;  %v398_v52 = vcombine.high %v373_v43, %v389_v39  ;;  %v413_v56 = vcombine.low %v380_v53, %v396_v49  ;;  %v414_v59 = vcombine.high %v380_v53, %v396_v49 }
  0xcd   : > { %465 = vxpose.xlu1.b32.start.end [1/1] (short) (narrow) %v361_v35, 8  ;;  %v405_v51 = vrot.slane %v397_v47, %v1670_v25 }
  0xce   : > { %v412_v55 = vrot.slane %v398_v52, %v1670_v25  ;;  %v421_v58 = vrot.slane %v413_v56, %v1670_v25  ;;  %v428_v61 = vrot.slane %v414_v59, %v1670_v25 }
  0xcf   : > { %497 = vxpose.xlu0.b32.start.end [1/1] (short) (narrow) %v344_v36, 8  ;;  %v429_v54 = vcombine.high %v405_v51, %v1533_v34 }
  0xd0   : > { %v430_v57 = vcombine.high %v412_v55, %v1533_v34  ;;  %v431_v60 = vcombine.high %v421_v58, %v1533_v34  ;;  %v432_v62 = vcombine.high %v428_v61, %v1533_v34 }
  0xd1   : > { %529 = vxpose.xlu1.b32.start.end [1/1] (short) (narrow) %v362_v40, 8 }
  0xd3   : > { %561 = vxpose.xlu0.b32.start.end [1/1] (short) (narrow) %v353_v41, 8 }
  0xd5   : > { %593 = vxpose.xlu1.b32.start.end [1/1] (short) (narrow) %v363_v45, 8 }
  0xd7   : > { %625 = vxpose.xlu0.b32.start.end [1/1] (short) (narrow) %v360_v46, 8 }
  0xd9   : > { %657 = vxpose.xlu1.b32.start.end [1/1] (short) (narrow) %v364_v50, 8 }
  0xdb   : > { %689 = vxpose.xlu0.b32.start.end [1/1] (short) (narrow) %v405_v51, 8 }
  0xdd   : > { %721 = vxpose.xlu1.b32.start.end [1/1] (short) (narrow) %v429_v54, 8 }
  0xdf   : > { %753 = vxpose.xlu0.b32.start.end [1/1] (short) (narrow) %v412_v55, 8 }
  0xe1   : > { %785 = vxpose.xlu1.b32.start.end [1/1] (short) (narrow) %v430_v57, 8 }
  0xe3   : > { %817 = vxpose.xlu0.b32.start.end [1/1] (short) (narrow) %v421_v58, 8 }
  0xe5   : > { %849 = vxpose.xlu1.b32.start.end [1/1] (short) (narrow) %v431_v60, 8 }
  0xe7   : > { %881 = vxpose.xlu0.b32.start.end [1/1] (short) (narrow) %v428_v61, 8 }
  0xe9   : > { %913 = vxpose.xlu1.b32.start.end [1/1] (short) (narrow) %v432_v62, 8 }
 0x14b   : > { %v449_v63 = vpop.trf.xlu0 }
 0x14d   : > { %v481_v0 = vpop.trf.xlu1 }
 0x14f   : > { %v513_v1 = vpop.trf.xlu0 }
 0x150   : > { %v945_v5 = vcombine.low %v449_v63, %v513_v1  ;;  %v946_v8 = vcombine.high %v449_v63, %v513_v1 }
 0x151   : > { %v545_v2 = vpop.trf.xlu1 }
 0x152   : > { %v961_v3 = vcombine.low %v481_v0, %v545_v2  ;;  %v962_v6 = vcombine.high %v481_v0, %v545_v2  ;;  %v953_v11 = vrot.slane %v945_v5, %v1666_v15  ;;  %v960_v19 = vrot.slane %v946_v8, %v1666_v15 }
 0x153   : > { %v577_v4 = vpop.trf.xlu0 }
 0x154   : > { %v969_v9 = vrot.slane %v961_v3, %v1666_v15  ;;  %v976_v12 = vrot.slane %v962_v6, %v1666_v15 }
 0x155   : > { %v609_v7 = vpop.trf.xlu1 }
 0x156   : > { %v1009_v20 = vcombine.low %v953_v11, %v969_v9  ;;  %v1010_v21 = vcombine.high %v953_v11, %v969_v9  ;;  %v1025_v28 = vcombine.low %v960_v19, %v976_v12  ;;  %v1026_v29 = vcombine.high %v960_v19, %v976_v12 }
 0x157   : > { %v641_v10 = vpop.trf.xlu0 }
 0x158   : > { %v977_v13 = vcombine.low %v577_v4, %v641_v10  ;;  %v978_v14 = vcombine.high %v577_v4, %v641_v10  ;;  %v1017_v35 = vrot.slane %v1009_v20, %v1670_v25  ;;  %v1024_v36 = vrot.slane %v1010_v21, %v1670_v25 }
 0x159   : > { %v673_v16 = vpop.trf.xlu1  ;;  %v1033_v42 = vrot.slane %v1025_v28, %v1670_v25  ;;  %v1040_v43 = vrot.slane %v1026_v29, %v1670_v25 }
 0x15a   : > { %v993_v17 = vcombine.low %v609_v7, %v673_v16  ;;  %v994_v18 = vcombine.high %v609_v7, %v673_v16  ;;  %v985_v23 = vrot.slane %v977_v13, %v1666_v15  ;;  %v992_v24 = vrot.slane %v978_v14, %v1666_v15 }
 0x15b   : > { %v705_v22 = vpop.trf.xlu0 }
 0x15c   : > { %v1001_v26 = vrot.slane %v993_v17, %v1666_v15  ;;  %v1008_v27 = vrot.slane %v994_v18, %v1666_v15 }
 0x15d   : > { %v737_v30 = vpop.trf.xlu1 }
 0x15e   : > { %v1041_v31 = vcombine.low %v985_v23, %v1001_v26  ;;  %v1042_v32 = vcombine.high %v985_v23, %v1001_v26  ;;  %v1057_v33 = vcombine.low %v992_v24, %v1008_v27  ;;  %v1058_v34 = vcombine.high %v992_v24, %v1008_v27 }
 0x15f   : > { %v769_v37 = vpop.trf.xlu0 }
 0x160   : > { %v1049_v38 = vrot.slane %v1041_v31, %v1670_v25  ;;  %v1056_v39 = vrot.slane %v1042_v32, %v1670_v25  ;;  %v1065_v40 = vrot.slane %v1057_v33, %v1670_v25  ;;  %v1072_v41 = vrot.slane %v1058_v34, %v1670_v25 }
 0x161   : > { %v801_v44 = vpop.trf.xlu1  ;;  %v1081_v56 = vcombine.low %v705_v22, %v769_v37  ;;  %v1082_v59 = vcombine.high %v705_v22, %v769_v37 }
 0x162   : > { %v1073_v45 = vcombine.low %v1017_v35, %v1049_v38  ;;  %v1074_v46 = vcombine.high %v1017_v35, %v1049_v38  ;;  %v1075_v47 = vcombine.low %v1024_v36, %v1056_v39  ;;  %v1076_v48 = vcombine.high %v1024_v36, %v1056_v39 }
 0x163   : > { %v1077_v49 = vcombine.low %v1033_v42, %v1065_v40  ;;  %v1078_v50 = vcombine.high %v1033_v42, %v1065_v40  ;;  %v1079_v51 = vcombine.low %v1040_v43, %v1072_v41  ;;  %v1080_v52 = vcombine.high %v1040_v43, %v1072_v41  ;;  %v833_v53 = vpop.trf.xlu0 }
 0x164   : > { %1218 = vst.msk [vmem:[%s1708_s19] sm:$0xff] %vm1217_vm0, %v1073_v45  ;;  %1220 = vst.msk [vmem:[%s1708_s19 + $0x10] sm:$0xff] %vm1217_vm0, %v1074_v46  ;;  %v1097_v54 = vcombine.low %v737_v30, %v801_v44  ;;  %v1098_v57 = vcombine.high %v737_v30, %v801_v44  ;;  %v1089_v0 = vrot.slane %v1081_v56, %v1666_v15 }
 0x165   : > { %1222 = vst.msk [vmem:[%s1708_s19 + $0x20] sm:$0xff] %vm1217_vm0, %v1075_v47  ;;  %1224 = vst.msk [vmem:[%s1708_s19 + $0x30] sm:$0xff] %vm1217_vm0, %v1076_v48  ;;  %v865_v55 = vpop.trf.xlu1  ;;  %v1096_v4 = vrot.slane %v1082_v59, %v1666_v15 }
 0x166   : > { %1226 = vst.msk [vmem:[%s1708_s19 + $0x40] sm:$0xff] %vm1217_vm0, %v1077_v49  ;;  %1228 = vst.msk [vmem:[%s1708_s19 + $0x50] sm:$0xff] %vm1217_vm0, %v1078_v50  ;;  %v1105_v60 = vrot.slane %v1097_v54, %v1666_v15  ;;  %v1112_v1 = vrot.slane %v1098_v57, %v1666_v15 }
 0x167   : > { %1230 = vst.msk [vmem:[%s1708_s19 + $0x60] sm:$0xff] %vm1217_vm0, %v1079_v51  ;;  %1232 = vst.msk [vmem:[%s1708_s19 + $0x70] sm:$0xff] %vm1217_vm0, %v1080_v52  ;;  %v897_v58 = vpop.trf.xlu0 }
 0x168   : > { %v1113_v61 = vcombine.low %v833_v53, %v897_v58  ;;  %v1114_v62 = vcombine.high %v833_v53, %v897_v58  ;;  %v1145_v5 = vcombine.low %v1089_v0, %v1105_v60  ;;  %v1146_v6 = vcombine.high %v1089_v0, %v1105_v60 }
 0x169   : > { %v929_v63 = vpop.trf.xlu1  ;;  %v1161_v11 = vcombine.low %v1096_v4, %v1112_v1  ;;  %v1162_v12 = vcombine.high %v1096_v4, %v1112_v1 }
 0x16a   : > { %v1129_v2 = vcombine.low %v865_v55, %v929_v63  ;;  %v1130_v3 = vcombine.high %v865_v55, %v929_v63  ;;  %v1121_v7 = vrot.slane %v1113_v61, %v1666_v15  ;;  %v1128_v8 = vrot.slane %v1114_v62, %v1666_v15 }
 0x16b   : > { %v1153_v18 = vrot.slane %v1145_v5, %v1670_v25  ;;  %v1160_v19 = vrot.slane %v1146_v6, %v1670_v25  ;;  %v1169_v23 = vrot.slane %v1161_v11, %v1670_v25  ;;  %v1176_v24 = vrot.slane %v1162_v12, %v1670_v25 }
 0x16c   : > { %v1137_v9 = vrot.slane %v1129_v2, %v1666_v15  ;;  %v1144_v10 = vrot.slane %v1130_v3, %v1666_v15 }
 0x16e   : > { %v1177_v13 = vcombine.low %v1121_v7, %v1137_v9  ;;  %v1178_v14 = vcombine.high %v1121_v7, %v1137_v9  ;;  %v1193_v16 = vcombine.low %v1128_v8, %v1144_v10  ;;  %v1194_v17 = vcombine.high %v1128_v8, %v1144_v10 }
 0x170   : > { %v1185_v20 = vrot.slane %v1177_v13, %v1670_v25  ;;  %v1192_v21 = vrot.slane %v1178_v14, %v1670_v25  ;;  %v1201_v15 = vrot.slane %v1193_v16, %v1670_v25  ;;  %v1208_v22 = vrot.slane %v1194_v17, %v1670_v25 }
 0x172   : > { %v1209_v26 = vcombine.low %v1153_v18, %v1185_v20  ;;  %v1210_v27 = vcombine.high %v1153_v18, %v1185_v20  ;;  %v1211_v28 = vcombine.low %v1160_v19, %v1192_v21  ;;  %v1212_v29 = vcombine.high %v1160_v19, %v1192_v21 }
 0x173   : > { %v1213_v30 = vcombine.low %v1169_v23, %v1201_v15  ;;  %v1214_v31 = vcombine.high %v1169_v23, %v1201_v15  ;;  %v1215_v32 = vcombine.low %v1176_v24, %v1208_v22  ;;  %v1216_v33 = vcombine.high %v1176_v24, %v1208_v22 }
 0x174   : > { %1219 = vst.msk [vmem:[%s1708_s19 + $0x8] sm:$0xff] %vm1217_vm0, %v1209_v26  ;;  %1221 = vst.msk [vmem:[%s1708_s19 + $0x18] sm:$0xff] %vm1217_vm0, %v1210_v27 }
 0x175   : > { %1223 = vst.msk [vmem:[%s1708_s19 + $0x28] sm:$0xff] %vm1217_vm0, %v1211_v28  ;;  %1225 = vst.msk [vmem:[%s1708_s19 + $0x38] sm:$0xff] %vm1217_vm0, %v1212_v29 }
 0x176   : > { %1227 = vst.msk [vmem:[%s1708_s19 + $0x48] sm:$0xff] %vm1217_vm0, %v1213_v30  ;;  %1229 = vst.msk [vmem:[%s1708_s19 + $0x58] sm:$0xff] %vm1217_vm0, %v1214_v31 }
 0x177   : > { %1231 = vst.msk [vmem:[%s1708_s19 + $0x68] sm:$0xff] %vm1217_vm0, %v1215_v32  ;;  %1233 = vst.msk [vmem:[%s1708_s19 + $0x78] sm:$0xff] %vm1217_vm0, %v1216_v33 }
 0x178 PF: > { %s14_s13 = sadd.s32 1, %s1525_s13   ;;  %s1788_s6 = smov %s1501_s7 }
 0x179   : > { %p11_p11 = scmp.ge.s32.totalorder %s14_s13, 6   ;;  %s1789_s7 = smov %s1505_s8 }
 0x17a   : > { %s1790_s8 = smov %s1611_s26  ;;  %s1791_s9 = smov %s1517_s11 }
 0x17b   : > { %s1792_s10 = smov %s1521_s12  ;;  %s1793_s11 = smov %s1796_s15 }
 0x17c   : > { %s1794_s12 = smov %s1800_s16  ;;  %13 = sbr.rel (!%p11_p11) target bundleno = 5 (0x5), region = 64 }
 0x183   :  { %1266 = vsyncpa [#allocation3], 1 }
 0x184   :  { %1268 = vsyncpa [#allocation3 + $0x1], 1 }

// kernel: tpu_custom_call.1
= control target key start
LH: loop header
LB: loop body
LE: loop exit
PB: predicated region body
PF: predicated region fallthrough
CT: control target
= control target key end

     0   :  { %6 = vsyncpa [#allocation3], 0  ;;  %s1782_s0 = inlined_call_operand.hbm [shape: f32[2,4,16,16], index: 0, kind: input, shape index: {}]   ;;  %s1783_s1 = inlined_call_operand.vmem [shape: f32[2,16,16,4], index: 1, kind: output, shape index: {}]  }
   0x1   :  { %8 = vsyncpa [#allocation3 + $0x1], 0  ;;  %s1544_s6 = smov 0   ;;  %s1546_s7 = smov 0  }
   0x2   :  { %s1548_s8 = smov 0   ;;  %s1550_s9 = smov 0  }
   0x3   :  { %s1552_s10 = smov 0   ;;  %s1554_s11 = smov 0  }
   0x4   :  { %s1556_s12 = smov 0   ;;  %s1558_s13 = smov 0  }
   0x5 LB: > { %s1337_s14 = sadd.s32 4294967295, %s1525_s13   ;;  %s23_s15 = sadd.s32 1, %s1517_s11  ;;  %s1525_s13 = sphi %s1558_s13, %s14_s13   ;;  %s1521_s12 = sphi %s1556_s12, %s1794_s12   ;;  %s1517_s11 = sphi %s1554_s11, %s1793_s11   ;;  %s1513_s10 = sphi %s1552_s10, %s1792_s10   ;;  %s1509_s9 = sphi %s1550_s9, %s1791_s9   ;;  %s1505_s8 = sphi %s1548_s8, %s1790_s8   ;;  %s1501_s7 = sphi %s1546_s7, %s1789_s7   ;;  %s1497_s6 = sphi %s1544_s6, %s1788_s6  }
   0x6   : > { %p24_p0 = scmp.ge.s32.totalorder %s23_s15, 2  ;;  %s26_s16 = sadd.s32 1, %s1521_s12 }
   0x7   : > { %s35_s17 = sadd.s32 1, %s1505_s8  ;;  %p42_p1 = scmp.ne.s32.totalorder %s1505_s8, %s1501_s7 }
   0x8   : > { %s1796_s15 = smov (%p24_p0, %s23_s15), 0  ;;  %s1798_s16 = smov (!%p24_p0, %s26_s16), %s1521_s12 }
   0x9   : > { %s31_s18 = ssub.s32 %s1517_s11, %s1796_s15  ;;  %p43_p2 = scmp.eq.s32.totalorder %s1525_s13, 0 }
   0xa   : > { %p28_p3 = scmp.ge.s32.totalorder %s1798_s16, 2  ;;  %p48_p4 = scmp.ne.s32.totalorder %s1501_s7, %s1497_s6 }
   0xb   : > { %p1595_p5 = por %p43_p2, %p42_p1  ;;  %p49_p6 = scmp.eq.s32.totalorder %s1337_s14, 0 }
   0xc   : > { %s1800_s16 = smov (%p28_p3, %s1798_s16), 0  ;;  %p1358_p8 = scmp.lt.s32.totalorder %s1525_s13, 4 }
   0xd   : > { %p1601_p7 = por %p49_p6, %p48_p4  ;;  %s30_s21 = ssub.s32 %s1521_s12, %s1800_s16 }
   0xe   : > { %s32_s22 = sor.u32 %s31_s18, %s30_s21  ;;  %s100_s23 = sand.u32 1, %s1505_s8  }
   0xf   : > { %p33_p9 = scmp.eq.s32.totalorder %s32_s22, 0  ;;  %s1341_s24 = sshll.u32 %s100_s23, 5 }
  0x10   : > { %s1342_s25 = sshll.u32 %s1521_s12, 3  ;;  %s104_s29 = scalar_lea.vmem [#allocation2], %s1341_s24 }
  0x11   : > { %s1611_s26 = scalar_select %p33_p9, %s1505_s8, %s35_s17  }
  0x12   : > { %s109_s27 = sadd.s32 %s1517_s11, %s1342_s25  ;;  %s112_s30 = sshll.u32 %s104_s29, 4  ;;  %s1619_s30 = int_to_ptr.vmem [resolvable:$true] %s112_s30 }
  0x13   : > { %s1343_s28 = sshll.u32 %s109_s27, 7  ;;  %p1625_p10 = pnand %p1358_p8, %p1595_p5 }
  0x14   : > { %s1617_s4 = scalar_lea.hbm %s1782_s0, %s1343_s28  ;;  %s1630_s6 = scalar_lea.sflag [#allocation3], %s100_s23 }
  0x15   : > { %s1429_s14 = scalar_lea.hbm %s1617_s4, 512  ;;  %p1431_p13 = pneg %p1625_p10 }
  0x16   : > { %p1430_p12 = scmp.ne.s32.totalorder %s1617_s4, %s1429_s14  ;;  %s1434_s19 = scalar_lea.hbm %s1782_s0, 2048 }
  0x17   : > { %p1435_p2 = scmp.lt.u32.totalorder %s1617_s4, %s1782_s0  ;;  %p1436_p3 = scmp.lt.u32.totalorder %s1434_s19, %s1429_s14 }
  0x18   : > { %p1432_p0 = pnand %p1431_p13, %p1430_p12  ;;  %p1438_p5 = scmp.lt.u32.totalorder %s1429_s14, %s1617_s4 }
  0x19   : > { %p1437_p4 = por %p1436_p3, %p1435_p2 }
  0x1a   : > { %p1433_p1 = pneg %p1432_p0 }
  0x1b   : > { %p1439_p6 = por %p1438_p5, %p1437_p4 }
  0x1d   : > { %p1440_p8 = pnand %p1439_p6, %p1433_p1 }
  0x1f   : > { %1443 = shalt.err (!%p1440_p8)
}
  0x20   : > { %s1444_s23 = scalar_lea.vmem %s1619_s30, 512  ;;  %s1527_s24 = smov [#allocation2]  }
  0x21   : > { %p1445_p9 = scmp.ne.s32.totalorder %s1619_s30, %s1444_s23  ;;  %s1449_s25 = sshll.u32 %s1527_s24, 4  ;;  %s1450_s25 = int_to_ptr.vmem [resolvable:$false] %s1449_s25 }
  0x22   : > { %s1451_s27 = scalar_lea.vmem %s1450_s25, 1024  ;;  %p1452_p11 = scmp.lt.s32.totalorder %s1619_s30, %s1450_s25 }
  0x23   : > { %p1447_p12 = pnand %p1445_p9, %p1431_p13  ;;  %p1453_p2 = scmp.lt.s32.totalorder %s1451_s27, %s1444_s23 }
  0x25   : > { %p1448_p0 = pneg %p1447_p12  ;;  %p1454_p3 = por %p1453_p2, %p1452_p11 }
  0x27   : > { %p1455_p4 = pnand %p1454_p3, %p1448_p0 }
  0x29   : > { %1458 = shalt.err (!%p1455_p4)
}
  0x2a   : > { %s1528_s28 = smov 256   ;;  %s1529_s29 = smov 128  }
  0x2b   : > { %s1530_s2 = smov 8   ;;  %p120_p13 = scmp.lt.s32.totalorder %s1525_s13, 5 }
  0x2c   : > { %1357 = dma.hbm_to_vmem [thread:$0]  (!%p1625_p10), %s1617_s4, 512, %s1619_s30, %s1630_s6, %s1528_s28, %s1529_s29, %s1530_s2  }
  0x2d   : > { %p1787_p1 = scmp.ge.s32.totalorder %s1525_s13, 1 }
  0x2f   : > { %p121_p5 = pnand %p1787_p1, %p120_p13 }
  0x30   : > { %s126_s3 = sand.u32 (!%p121_p5), 1, %s1501_s7  }
  0x31   : > { %124 = sbr.rel (%p121_p5) target bundleno = 376 (0x178), region = 24  ;;  %s1345_s14 = sshll.u32 (!%p121_p5), %s126_s3, 5 }
  0x32   : > { %s127_s17 = scalar_lea.sflag (!%p121_p5), [#allocation3], %s126_s3  ;;  %s130_s18 = scalar_lea.vmem (!%p121_p5), [#allocation2], %s1345_s14 }
  0x38   : > { %1492 = dma.done.wait (%p1601_p7), %s127_s17, 512  }
  0x39   : > { %1494 = vsyncadd (%p1601_p7), %s127_s17, 4294966784  ;;  %v167_v0 = vld [vmem:[%s130_s18 + $0x10] sm:$0xff]  ;;  %v165_v1 = vld [vmem:[%s130_s18] sm:$0xff]  ;;  %v1531_v4 = vmov 1983009808   ;;  %v302_v6 = vlaneseq  ;;  %v1533_v34 = vmov 0.0  }
  0x3a   : > { %233 = vxpose.xlu1.b32.start.end [1/1] (short) (narrow) %v167_v0, 16  ;;  %169 = vxpose.xlu0.b32.start.end [1/1] (short) (narrow) %v165_v1, 16  ;;  %v168_v2 = vld [vmem:[%s130_s18 + $0x18] sm:$0xff]  ;;  %v166_v3 = vld [vmem:[%s130_s18 + $0x8] sm:$0xff]  ;;  %v300_v5 = vunpack.c.l.s4 %v1531_v4  ;;  %v1532_v11 = vmov 1934713408  }
  0x3b   : > { %v303_v10 = vshrl.u32 %v302_v6, 7  ;;  %v332_v12 = vunpack.c.l.s4 %v1532_v11  ;;  %s1346_s20 = sshll.u32 %s1509_s9, 3  ;;  %p155_p7 = scmp.lt.s32.totalorder %s1513_s10, 1  ;;  %vm1217_vm0 = vcmask 31744  }
  0x3c   : > { %v301_v9 = vunpack.c.0.s8 %v300_v5  ;;  %p157_p10 = scmp.lt.s32.totalorder %s1346_s20, 15 }
  0x3d   : > { %v333_v17 = vunpack.c.0.s8 %v332_v12  ;;  %s1802_s10 = smov (!%p155_p7, %s1513_s10), 1 }
  0x3e   : > { %v1666_v15 = vsub.s32 %v301_v9, %v303_v10  ;;  %s1804_s20 = smov (!%p157_p10, %s1346_s20), 15  ;;  %s1348_s4 = sshll.u32 %s1802_s10, 5 }
  0x3f   : > { %265 = vxpose.xlu1.b32.start.end [1/1] (short) (narrow) %v168_v2, 16  ;;  %201 = vxpose.xlu0.b32.start.end [1/1] (short) (narrow) %v166_v3, 16  ;;  %v1670_v25 = vsub.s32 %v333_v17, %v303_v10  ;;  %s1347_s30 = sshll.u32 %s1804_s20, 1 }
  0x40   : > { %s161_s9 = sadd.s32 %s1348_s4, %s1347_s30 }
  0x41   : > { %s1349_s10 = sshll.u32 %s161_s9, 3 }
  0x42   : > { %s1708_s19 = scalar_lea.vmem %s1783_s1, %s1349_s10 }
  0xba   : > { %v249_v7 = vpop.trf.xlu1  ;;  %v185_v8 = vpop.trf.xlu0 }
  0xbb   : > { %v297_v16 = vcombine.low %v185_v8, %v249_v7  ;;  %v298_v22 = vcombine.high %v185_v8, %v249_v7 }
  0xbd   : > { %v305_v23 = vrot.slane %v297_v16, %v1666_v15  ;;  %v312_v31 = vrot.slane %v298_v22, %v1666_v15 }
  0xbe   : > { %v250_v13 = vpop.trf.xlu1  ;;  %v186_v14 = vpop.trf.xlu0 }
  0xbf   : > { %v365_v38 = vcombine.low %v186_v14, %v250_v13  ;;  %v366_v48 = vcombine.high %v186_v14, %v250_v13 }
  0xc1   : > { %v373_v43 = vrot.slane %v365_v38, %v1666_v15  ;;  %v380_v53 = vrot.slane %v366_v48, %v1666_v15 }
  0xc2   : > { %v281_v18 = vpop.trf.xlu1  ;;  %v217_v19 = vpop.trf.xlu0 }
  0xc3   : > { %v313_v20 = vcombine.low %v217_v19, %v281_v18  ;;  %v314_v21 = vcombine.high %v217_v19, %v281_v18 }
  0xc5   : > { %v321_v24 = vrot.slane %v313_v20, %v1666_v15  ;;  %v328_v26 = vrot.slane %v314_v21, %v1666_v15 }
  0xc6   : > { %v282_v29 = vpop.trf.xlu1  ;;  %v218_v30 = vpop.trf.xlu0 }
  0xc7   : > { %v329_v27 = vcombine.low %v305_v23, %v321_v24  ;;  %v330_v28 = vcombine.high %v305_v23, %v321_v24  ;;  %v381_v33 = vcombine.low %v218_v30, %v282_v29  ;;  %v345_v37 = vcombine.low %v312_v31, %v328_v26 }
  0xc8   : > { %v346_v42 = vcombine.high %v312_v31, %v328_v26  ;;  %v382_v44 = vcombine.high %v218_v30, %v282_v29 }
  0xc9   : > { %v337_v32 = vrot.slane %v329_v27, %v1670_v25  ;;  %v344_v36 = vrot.slane %v330_v28, %v1670_v25  ;;  %v389_v39 = vrot.slane %v381_v33, %v1666_v15  ;;  %v353_v41 = vrot.slane %v345_v37, %v1670_v25 }
  0xca   : > { %v360_v46 = vrot.slane %v346_v42, %v1670_v25  ;;  %v396_v49 = vrot.slane %v382_v44, %v1666_v15 }
  0xcb   : > { %433 = vxpose.xlu0.b32.start.end [1/1] (short) (narrow) %v337_v32, 8  ;;  %v361_v35 = vcombine.high %v337_v32, %v1533_v34  ;;  %v362_v40 = vcombine.high %v344_v36, %v1533_v34  ;;  %v363_v45 = vcombine.high %v353_v41, %v1533_v34  ;;  %v397_v47 = vcombine.low %v373_v43, %v389_v39 }
  0xcc   : > { %v364_v50 = vcombine.high %v360_v46, %v1533_v34  ;;  %v398_v52 = vcombine.high %v373_v43, %v389_v39  ;;  %v413_v56 = vcombine.low %v380_v53, %v396_v49  ;;  %v414_v59 = vcombine.high %v380_v53, %v396_v49 }
  0xcd   : > { %465 = vxpose.xlu1.b32.start.end [1/1] (short) (narrow) %v361_v35, 8  ;;  %v405_v51 = vrot.slane %v397_v47, %v1670_v25 }
  0xce   : > { %v412_v55 = vrot.slane %v398_v52, %v1670_v25  ;;  %v421_v58 = vrot.slane %v413_v56, %v1670_v25  ;;  %v428_v61 = vrot.slane %v414_v59, %v1670_v25 }
  0xcf   : > { %497 = vxpose.xlu0.b32.start.end [1/1] (short) (narrow) %v344_v36, 8  ;;  %v429_v54 = vcombine.high %v405_v51, %v1533_v34 }
  0xd0   : > { %v430_v57 = vcombine.high %v412_v55, %v1533_v34  ;;  %v431_v60 = vcombine.high %v421_v58, %v1533_v34  ;;  %v432_v62 = vcombine.high %v428_v61, %v1533_v34 }
  0xd1   : > { %529 = vxpose.xlu1.b32.start.end [1/1] (short) (narrow) %v362_v40, 8 }
  0xd3   : > { %561 = vxpose.xlu0.b32.start.end [1/1] (short) (narrow) %v353_v41, 8 }
  0xd5   : > { %593 = vxpose.xlu1.b32.start.end [1/1] (short) (narrow) %v363_v45, 8 }
  0xd7   : > { %625 = vxpose.xlu0.b32.start.end [1/1] (short) (narrow) %v360_v46, 8 }
  0xd9   : > { %657 = vxpose.xlu1.b32.start.end [1/1] (short) (narrow) %v364_v50, 8 }
  0xdb   : > { %689 = vxpose.xlu0.b32.start.end [1/1] (short) (narrow) %v405_v51, 8 }
  0xdd   : > { %721 = vxpose.xlu1.b32.start.end [1/1] (short) (narrow) %v429_v54, 8 }
  0xdf   : > { %753 = vxpose.xlu0.b32.start.end [1/1] (short) (narrow) %v412_v55, 8 }
  0xe1   : > { %785 = vxpose.xlu1.b32.start.end [1/1] (short) (narrow) %v430_v57, 8 }
  0xe3   : > { %817 = vxpose.xlu0.b32.start.end [1/1] (short) (narrow) %v421_v58, 8 }
  0xe5   : > { %849 = vxpose.xlu1.b32.start.end [1/1] (short) (narrow) %v431_v60, 8 }
  0xe7   : > { %881 = vxpose.xlu0.b32.start.end [1/1] (short) (narrow) %v428_v61, 8 }
  0xe9   : > { %913 = vxpose.xlu1.b32.start.end [1/1] (short) (narrow) %v432_v62, 8 }
 0x14b   : > { %v449_v63 = vpop.trf.xlu0 }
 0x14d   : > { %v481_v0 = vpop.trf.xlu1 }
 0x14f   : > { %v513_v1 = vpop.trf.xlu0 }
 0x150   : > { %v945_v5 = vcombine.low %v449_v63, %v513_v1  ;;  %v946_v8 = vcombine.high %v449_v63, %v513_v1 }
 0x151   : > { %v545_v2 = vpop.trf.xlu1 }
 0x152   : > { %v961_v3 = vcombine.low %v481_v0, %v545_v2  ;;  %v962_v6 = vcombine.high %v481_v0, %v545_v2  ;;  %v953_v11 = vrot.slane %v945_v5, %v1666_v15  ;;  %v960_v19 = vrot.slane %v946_v8, %v1666_v15 }
 0x153   : > { %v577_v4 = vpop.trf.xlu0 }
 0x154   : > { %v969_v9 = vrot.slane %v961_v3, %v1666_v15  ;;  %v976_v12 = vrot.slane %v962_v6, %v1666_v15 }
 0x155   : > { %v609_v7 = vpop.trf.xlu1 }
 0x156   : > { %v1009_v20 = vcombine.low %v953_v11, %v969_v9  ;;  %v1010_v21 = vcombine.high %v953_v11, %v969_v9  ;;  %v1025_v28 = vcombine.low %v960_v19, %v976_v12  ;;  %v1026_v29 = vcombine.high %v960_v19, %v976_v12 }
 0x157   : > { %v641_v10 = vpop.trf.xlu0 }
 0x158   : > { %v977_v13 = vcombine.low %v577_v4, %v641_v10  ;;  %v978_v14 = vcombine.high %v577_v4, %v641_v10  ;;  %v1017_v35 = vrot.slane %v1009_v20, %v1670_v25  ;;  %v1024_v36 = vrot.slane %v1010_v21, %v1670_v25 }
 0x159   : > { %v673_v16 = vpop.trf.xlu1  ;;  %v1033_v42 = vrot.slane %v1025_v28, %v1670_v25  ;;  %v1040_v43 = vrot.slane %v1026_v29, %v1670_v25 }
 0x15a   : > { %v993_v17 = vcombine.low %v609_v7, %v673_v16  ;;  %v994_v18 = vcombine.high %v609_v7, %v673_v16  ;;  %v985_v23 = vrot.slane %v977_v13, %v1666_v15  ;;  %v992_v24 = vrot.slane %v978_v14, %v1666_v15 }
 0x15b   : > { %v705_v22 = vpop.trf.xlu0 }
 0x15c   : > { %v1001_v26 = vrot.slane %v993_v17, %v1666_v15  ;;  %v1008_v27 = vrot.slane %v994_v18, %v1666_v15 }
 0x15d   : > { %v737_v30 = vpop.trf.xlu1 }
 0x15e   : > { %v1041_v31 = vcombine.low %v985_v23, %v1001_v26  ;;  %v1042_v32 = vcombine.high %v985_v23, %v1001_v26  ;;  %v1057_v33 = vcombine.low %v992_v24, %v1008_v27  ;;  %v1058_v34 = vcombine.high %v992_v24, %v1008_v27 }
 0x15f   : > { %v769_v37 = vpop.trf.xlu0 }
 0x160   : > { %v1049_v38 = vrot.slane %v1041_v31, %v1670_v25  ;;  %v1056_v39 = vrot.slane %v1042_v32, %v1670_v25  ;;  %v1065_v40 = vrot.slane %v1057_v33, %v1670_v25  ;;  %v1072_v41 = vrot.slane %v1058_v34, %v1670_v25 }
 0x161   : > { %v801_v44 = vpop.trf.xlu1  ;;  %v1081_v56 = vcombine.low %v705_v22, %v769_v37  ;;  %v1082_v59 = vcombine.high %v705_v22, %v769_v37 }
 0x162   : > { %v1073_v45 = vcombine.low %v1017_v35, %v1049_v38  ;;  %v1074_v46 = vcombine.high %v1017_v35, %v1049_v38  ;;  %v1075_v47 = vcombine.low %v1024_v36, %v1056_v39  ;;  %v1076_v48 = vcombine.high %v1024_v36, %v1056_v39 }
 0x163   : > { %v1077_v49 = vcombine.low %v1033_v42, %v1065_v40  ;;  %v1078_v50 = vcombine.high %v1033_v42, %v1065_v40  ;;  %v1079_v51 = vcombine.low %v1040_v43, %v1072_v41  ;;  %v1080_v52 = vcombine.high %v1040_v43, %v1072_v41  ;;  %v833_v53 = vpop.trf.xlu0 }
 0x164   : > { %1218 = vst.msk [vmem:[%s1708_s19] sm:$0xff] %vm1217_vm0, %v1073_v45  ;;  %1220 = vst.msk [vmem:[%s1708_s19 + $0x10] sm:$0xff] %vm1217_vm0, %v1074_v46  ;;  %v1097_v54 = vcombine.low %v737_v30, %v801_v44  ;;  %v1098_v57 = vcombine.high %v737_v30, %v801_v44  ;;  %v1089_v0 = vrot.slane %v1081_v56, %v1666_v15 }
 0x165   : > { %1222 = vst.msk [vmem:[%s1708_s19 + $0x20] sm:$0xff] %vm1217_vm0, %v1075_v47  ;;  %1224 = vst.msk [vmem:[%s1708_s19 + $0x30] sm:$0xff] %vm1217_vm0, %v1076_v48  ;;  %v865_v55 = vpop.trf.xlu1  ;;  %v1096_v4 = vrot.slane %v1082_v59, %v1666_v15 }
 0x166   : > { %1226 = vst.msk [vmem:[%s1708_s19 + $0x40] sm:$0xff] %vm1217_vm0, %v1077_v49  ;;  %1228 = vst.msk [vmem:[%s1708_s19 + $0x50] sm:$0xff] %vm1217_vm0, %v1078_v50  ;;  %v1105_v60 = vrot.slane %v1097_v54, %v1666_v15  ;;  %v1112_v1 = vrot.slane %v1098_v57, %v1666_v15 }
 0x167   : > { %1230 = vst.msk [vmem:[%s1708_s19 + $0x60] sm:$0xff] %vm1217_vm0, %v1079_v51  ;;  %1232 = vst.msk [vmem:[%s1708_s19 + $0x70] sm:$0xff] %vm1217_vm0, %v1080_v52  ;;  %v897_v58 = vpop.trf.xlu0 }
 0x168   : > { %v1113_v61 = vcombine.low %v833_v53, %v897_v58  ;;  %v1114_v62 = vcombine.high %v833_v53, %v897_v58  ;;  %v1145_v5 = vcombine.low %v1089_v0, %v1105_v60  ;;  %v1146_v6 = vcombine.high %v1089_v0, %v1105_v60 }
 0x169   : > { %v929_v63 = vpop.trf.xlu1  ;;  %v1161_v11 = vcombine.low %v1096_v4, %v1112_v1  ;;  %v1162_v12 = vcombine.high %v1096_v4, %v1112_v1 }
 0x16a   : > { %v1129_v2 = vcombine.low %v865_v55, %v929_v63  ;;  %v1130_v3 = vcombine.high %v865_v55, %v929_v63  ;;  %v1121_v7 = vrot.slane %v1113_v61, %v1666_v15  ;;  %v1128_v8 = vrot.slane %v1114_v62, %v1666_v15 }
 0x16b   : > { %v1153_v18 = vrot.slane %v1145_v5, %v1670_v25  ;;  %v1160_v19 = vrot.slane %v1146_v6, %v1670_v25  ;;  %v1169_v23 = vrot.slane %v1161_v11, %v1670_v25  ;;  %v1176_v24 = vrot.slane %v1162_v12, %v1670_v25 }
 0x16c   : > { %v1137_v9 = vrot.slane %v1129_v2, %v1666_v15  ;;  %v1144_v10 = vrot.slane %v1130_v3, %v1666_v15 }
 0x16e   : > { %v1177_v13 = vcombine.low %v1121_v7, %v1137_v9  ;;  %v1178_v14 = vcombine.high %v1121_v7, %v1137_v9  ;;  %v1193_v16 = vcombine.low %v1128_v8, %v1144_v10  ;;  %v1194_v17 = vcombine.high %v1128_v8, %v1144_v10 }
 0x170   : > { %v1185_v20 = vrot.slane %v1177_v13, %v1670_v25  ;;  %v1192_v21 = vrot.slane %v1178_v14, %v1670_v25  ;;  %v1201_v15 = vrot.slane %v1193_v16, %v1670_v25  ;;  %v1208_v22 = vrot.slane %v1194_v17, %v1670_v25 }
 0x172   : > { %v1209_v26 = vcombine.low %v1153_v18, %v1185_v20  ;;  %v1210_v27 = vcombine.high %v1153_v18, %v1185_v20  ;;  %v1211_v28 = vcombine.low %v1160_v19, %v1192_v21  ;;  %v1212_v29 = vcombine.high %v1160_v19, %v1192_v21 }
 0x173   : > { %v1213_v30 = vcombine.low %v1169_v23, %v1201_v15  ;;  %v1214_v31 = vcombine.high %v1169_v23, %v1201_v15  ;;  %v1215_v32 = vcombine.low %v1176_v24, %v1208_v22  ;;  %v1216_v33 = vcombine.high %v1176_v24, %v1208_v22 }
 0x174   : > { %1219 = vst.msk [vmem:[%s1708_s19 + $0x8] sm:$0xff] %vm1217_vm0, %v1209_v26  ;;  %1221 = vst.msk [vmem:[%s1708_s19 + $0x18] sm:$0xff] %vm1217_vm0, %v1210_v27 }
 0x175   : > { %1223 = vst.msk [vmem:[%s1708_s19 + $0x28] sm:$0xff] %vm1217_vm0, %v1211_v28  ;;  %1225 = vst.msk [vmem:[%s1708_s19 + $0x38] sm:$0xff] %vm1217_vm0, %v1212_v29 }
 0x176   : > { %1227 = vst.msk [vmem:[%s1708_s19 + $0x48] sm:$0xff] %vm1217_vm0, %v1213_v30  ;;  %1229 = vst.msk [vmem:[%s1708_s19 + $0x58] sm:$0xff] %vm1217_vm0, %v1214_v31 }
 0x177   : > { %1231 = vst.msk [vmem:[%s1708_s19 + $0x68] sm:$0xff] %vm1217_vm0, %v1215_v32  ;;  %1233 = vst.msk [vmem:[%s1708_s19 + $0x78] sm:$0xff] %vm1217_vm0, %v1216_v33 }
 0x178 PF: > { %s14_s13 = sadd.s32 1, %s1525_s13   ;;  %s1788_s6 = smov %s1501_s7 }
 0x179   : > { %p11_p11 = scmp.ge.s32.totalorder %s14_s13, 6   ;;  %s1789_s7 = smov %s1505_s8 }
 0x17a   : > { %s1790_s8 = smov %s1611_s26  ;;  %s1791_s9 = smov %s1517_s11 }
 0x17b   : > { %s1792_s10 = smov %s1521_s12  ;;  %s1793_s11 = smov %s1796_s15 }
 0x17c   : > { %s1794_s12 = smov %s1800_s16  ;;  %13 = sbr.rel (!%p11_p11) target bundleno = 5 (0x5), region = 64 }
 0x183   :  { %1266 = vsyncpa [#allocation3], 1 }
 0x184   :  { %1268 = vsyncpa [#allocation3 + $0x1], 1 }

</bundles_post_ra>
